<compile_context>
chip_gen: v7x
topology: tpu7x:2x2x1
jax: 0.10.0
libtpu: 0.0.40
codegen_flags: <defaults>
</compile_context>

<pallas_src>
import math

import jax
import jax.numpy as jnp
from jax.experimental import pallas as pl
from jax.experimental.pallas import tpu as pltpu


_LANE = 128
_VMEM_TILE_BUDGET = 40 * 1024 * 1024   # double-buffered per-step tile working set
_VMEM_LIMIT_BYTES = 48 * 1024 * 1024   # < v7x 64 MiB/TC, > v5e/v6e scoped defaults


def _round_up(a, b):
    return ((a + b - 1) // b) * b


def _fused_proto_kernel(x_ref, w_ref, o_ref):
    # One (tm, D) x (D, tn) MXU matmul per grid step; accumulate in f32.
    o_ref[...] = jnp.dot(
        x_ref[...], w_ref[...], preferred_element_type=jnp.float32
    ).astype(o_ref.dtype)


def fused_prototypes_matmul(x, w_cat, *, out_dtype=None, max_row_tile=512,
                            max_col_tile=1024,
                            vmem_tile_budget=_VMEM_TILE_BUDGET):
    """out = x @ w_cat  (x: (N, D), w_cat: (D, K)), returned as (N, K).

    N is padded to the row tile (chosen to minimize waste; 16-sublane rounding
    for sub-32-bit inputs), K to a multiple of the column tile (>=128 so stores
    are lane-dense/unmasked). Padding is zero-filled and sliced off, so the
    result is exactly x @ w_cat in the supplied dtypes. If the fused weight fits
    in VMEM it is made resident and fetched from HBM exactly once.
    """
    N, D = x.shape
    Dw, K = w_cat.shape
    assert D == Dw, (D, Dw)
    out_dtype = out_dtype or x.dtype

    x_item = jnp.dtype(x.dtype).itemsize
    w_item = jnp.dtype(w_cat.dtype).itemsize
    out_item = jnp.dtype(out_dtype).itemsize

    # --- row tile: native sublane packing, minimal padding waste ---
    sub = 16 if x_item < 4 else 8
    if N <= max_row_tile:
        tm = _round_up(N, sub)
        n_pad = tm
    else:
        cands = [t for t in (512, 256, 128) if t % sub == 0]
        tm = min(cands, key=lambda t: (_round_up(N, t) - N, -t))
        n_pad = _round_up(N, tm)

    def tile_bytes(tn):
        # BlockSpec double-buffers every operand's block.
        return 2 * (tm * D * x_item + D * tn * w_item + tm * tn * out_item)

    # --- column tile: weight-resident if it fits, else largest 128-multiple tile ---
    k128 = _round_up(K, _LANE)
    weight_resident = tile_bytes(k128) <= vmem_tile_budget
    if weight_resident:
        tn = k128
    else:
        tn = _LANE
        for cand in (max_col_tile, max_col_tile // 2, max_col_tile // 4, _LANE):
            if cand >= _LANE and tile_bytes(cand) <= vmem_tile_budget:
                tn = cand
                break
    k_pad = _round_up(K, tn)

    x_p = x if n_pad == N else jnp.pad(x, ((0, n_pad - N), (0, 0)))
    w_p = w_cat if k_pad == K else jnp.pad(w_cat, ((0, 0), (0, k_pad - K)))

    rows = n_pad // tm
    cols = k_pad // tn
    x_bytes = n_pad * D * x_item
    w_bytes = D * k_pad * w_item
    o_bytes = n_pad * k_pad * out_item

    if weight_resident:
        # 1-D grid over row tiles; W's block index is constant -> DMA'd exactly once.
        grid = (rows,)
        in_specs = [
            pl.BlockSpec((tm, D), lambda i: (i, 0)),        # x row tile
            pl.BlockSpec((D, k_pad), lambda i: (0, 0)),     # whole fused weight
        ]
        out_specs = pl.BlockSpec((tm, k_pad), lambda i: (i, 0))
        dim_sem = ("parallel",)
        bytes_accessed = x_bytes + w_bytes + o_bytes
    elif w_bytes >= x_bytes:
        # Larger operand (W) on the outer axis -> streamed from HBM exactly once;
        # the smaller x is the one re-read (cols times).
        grid = (cols, rows)
        in_specs = [
            pl.BlockSpec((tm, D), lambda j, i: (i, 0)),
            pl.BlockSpec((D, tn), lambda j, i: (0, j)),
        ]
        out_specs = pl.BlockSpec((tm, tn), lambda j, i: (i, j))
        dim_sem = ("parallel", "parallel")
        bytes_accessed = cols * x_bytes + w_bytes + o_bytes
    else:
        # x larger -> rows on the outer axis, W re-read (rows times).
        grid = (rows, cols)
        in_specs = [
            pl.BlockSpec((tm, D), lambda i, j: (i, 0)),
            pl.BlockSpec((D, tn), lambda i, j: (0, j)),
        ]
        out_specs = pl.BlockSpec((tm, tn), lambda i, j: (i, j))
        dim_sem = ("parallel", "parallel")
        bytes_accessed = x_bytes + rows * w_bytes + o_bytes

    cost = pl.CostEstimate(
        flops=2 * n_pad * D * k_pad,
        transcendentals=0,
        bytes_accessed=int(bytes_accessed),
    )

    out = pl.pallas_call(
        _fused_proto_kernel,
        out_shape=jax.ShapeDtypeStruct((n_pad, k_pad), out_dtype),
        grid=grid,
        in_specs=in_specs,
        out_specs=out_specs,
        compiler_params=pltpu.CompilerParams(
            dimension_semantics=dim_sem,
            vmem_limit_bytes=_VMEM_LIMIT_BYTES,
        ),
        cost_estimate=cost,
    )(x_p, w_p)

    return out[:N, :K]


class MultiPrototypes:
    """JAX/Pallas port of the PyTorch MultiPrototypes module.

    All prototype heads are fused into one (D, sum_k_pad) weight; each head
    occupies a 128-aligned column slot (padded once at init). A single Pallas
    matmul produces every head's logits, then lane-aligned per-head slices are
    returned (padding columns never leave the wrapper).
    """

    def __init__(self, output_dim, num_prot, key, dtype=jnp.float32,
                 compute_dtype=jnp.bfloat16, out_dtype=None):
        self.nmb_heads = len(num_prot)
        self.num_prot = list(num_prot)
        self.output_dim = output_dim
        self.compute_dtype = compute_dtype   # bf16 default (f32 accumulation)
        self.out_dtype = out_dtype           # None -> match x.dtype

        keys = jax.random.split(key, self.nmb_heads)
        bound = 1.0 / math.sqrt(output_dim)  # nn.Linear default (kaiming-uniform)
        ws = []
        self.pad_offsets = [0]
        for k_i, subkey in zip(self.num_prot, keys):
            w_pt = jax.random.uniform(
                subkey, (k_i, output_dim), dtype=dtype, minval=-bound, maxval=bound
            )
            w_t = jnp.transpose(w_pt)                 # (D, k_i)  == torch W_i.T
            k_slot = _round_up(k_i, _LANE)            # lane-aligned head slot
            if k_slot != k_i:
                w_t = jnp.pad(w_t, ((0, 0), (0, k_slot - k_i)))
            ws.append(w_t)
            self.pad_offsets.append(self.pad_offsets[-1] + k_slot)

        self.w_cat = jnp.concatenate(ws, axis=1)      # (D, sum_k_pad), param dtype
        # Cast to compute dtype ONCE at init, not per forward call.
        self.w_compute = (self.w_cat.astype(compute_dtype)
                          if compute_dtype is not None else self.w_cat)

    def head_weight(self, i):
        """Per-head (D, k_i) weight in parameter dtype (equals torch W_i.T)."""
        off = self.pad_offsets[i]
        return self.w_cat[:, off:off + self.num_prot[i]]

    def __call__(self, x):
        xin = x.astype(self.compute_dtype) if self.compute_dtype is not None else x
        out_dtype = self.out_dtype or x.dtype
        fused = fused_prototypes_matmul(xin, self.w_compute, out_dtype=out_dtype)
        outs = []
        for i, k_i in enumerate(self.num_prot):
            off = self.pad_offsets[i]
            outs.append(fused[:, off:off + k_i])
        return outs


if __name__ == "__main__":
    key = jax.random.PRNGKey(0)
    k_x, k_w = jax.random.split(key)

    N, D = 8, 32            # batch, output_dim (feature dim fed to prototypes)
    num_prot = [16, 8, 4]   # three prototype heads

    x = jax.random.normal(k_x, (N, D), dtype=jnp.float32)

    # --- exact f32 compute path ---
    model_f32 = MultiPrototypes(D, num_prot, k_w, compute_dtype=jnp.float32)
    outs_f32 = [jax.block_until_ready(o) for o in model_f32(x)]
    for o, k_i, i in zip(outs_f32, num_prot, range(len(num_prot))):
        ref = x @ model_f32.head_weight(i)
        assert o.shape == (N, k_i), o.shape
        assert jnp.allclose(o, ref, atol=1e-5, rtol=1e-5)

    # --- default bf16 compute path (f32 accumulation) ---
    model_bf16 = MultiPrototypes(D, num_prot, k_w)   # same weights (same key)
    outs_bf16 = [jax.block_until_ready(o) for o in model_bf16(x)]
    for o, k_i, i in zip(outs_bf16, num_prot, range(len(num_prot))):
        ref_bf = jnp.dot(
            x.astype(jnp.bfloat16),
            model_bf16.head_weight(i).astype(jnp.bfloat16),
            preferred_element_type=jnp.float32,
        ).astype(x.dtype)
        assert o.shape == (N, k_i), o.shape
        assert jnp.allclose(o, ref_bf, atol=2e-3, rtol=2e-3)

    print("KERNEL_OK")
</pallas_src>

<mosaic_0001>
module attributes {stable_mosaic.version = 11 : i64} {
  func.func @_fused_proto_kernel(%arg0: i32, %arg1: memref<8x32xf32, #tpu.memory_space<vmem>>, %arg2: memref<32x384xf32, #tpu.memory_space<vmem>>, %arg3: memref<8x384xf32, #tpu.memory_space<vmem>>) attributes {dimension_semantics = [#tpu.dimension_semantics<parallel>], iteration_bounds = array<i64: 1>, scalar_prefetch = 0 : i64, scratch_operands = 0 : i64, tpu.core_type = #tpu.core_type<tc>, window_params = [{transform_indices = @transform_0, window_bounds = array<i64: 8, 32>}, {pipeline_mode = #tpu.pipeline_mode<synchronous>, transform_indices = @transform_1, window_bounds = array<i64: 32, 384>}, {transform_indices = @transform_2, window_bounds = array<i64: 8, 384>}]} {
    %c0 = arith.constant 0 : index
    %c0_0 = arith.constant 0 : index
    %0 = vector.load %arg1[%c0, %c0_0] : memref<8x32xf32, #tpu.memory_space<vmem>>, vector<8x32xf32>
    %c0_1 = arith.constant 0 : index
    %c0_2 = arith.constant 0 : index
    %1 = vector.load %arg2[%c0_1, %c0_2] : memref<32x384xf32, #tpu.memory_space<vmem>>, vector<32x384xf32>
    %cst = arith.constant dense<0.000000e+00> : vector<8x384xf32>
    %2 = tpu.matmul %0, %1, %cst {dimension_numbers = #tpu.dot_dimension_numbers<[1], [0], [0], [1], [0, 0, 1, 1], [], []>} : vector<8x32xf32>, vector<32x384xf32>, vector<8x384xf32> -> vector<8x384xf32>
    %c0_3 = arith.constant 0 : index
    %c0_4 = arith.constant 0 : index
    %3 = vector.load %arg3[%c0_3, %c0_4] : memref<8x384xf32, #tpu.memory_space<vmem>>, vector<8x384xf32>
    tpu.vector_store %arg3[%c0_3, %c0_4], %2 {strides = array<i32>} : memref<8x384xf32, #tpu.memory_space<vmem>>, vector<8x384xf32>,
    return
  }
  func.func @transform_0(%arg0: i32) -> (i32, i32) {
    %c0_i32 = arith.constant 0 : i32
    %c0_i32_0 = arith.constant 0 : i32
    return %arg0, %c0_i32 : i32, i32
  }
  func.func @transform_1(%arg0: i32) -> (i32, i32) {
    %c0_i32 = arith.constant 0 : i32
    %c0_i32_0 = arith.constant 0 : i32
    %c0_i32_1 = arith.constant 0 : i32
    return %c0_i32, %c0_i32_0 : i32, i32
  }
  func.func @transform_2(%arg0: i32) -> (i32, i32) {
    %c0_i32 = arith.constant 0 : i32
    %c0_i32_0 = arith.constant 0 : i32
    return %arg0, %c0_i32 : i32, i32
  }
}

</mosaic_0001>

<bundles_post_ra>
// kernel: tpu_custom_call.1
= control target key start
LH: loop header
LB: loop body
LE: loop exit
PB: predicated region body
PF: predicated region fallthrough
CT: control target
= control target key end

     0   :  { %7 = vsyncpa [#allocation3], 0  ;;  %s393_s0 = inlined_call_operand.hbm [shape: f32[8,32], index: 0, kind: input, shape index: {}]   ;;  %s394_s1 = inlined_call_operand.hbm [shape: f32[32,384], index: 1, kind: input, shape index: {}]   ;;  %s395_s2 = inlined_call_operand.hbm [shape: f32[8,384], index: 2, kind: output, shape index: {}]  }
   0x1   :  { %8 = vsyncpa [#allocation6], 0 }
   0x2   :  { %9 = vsyncpa [#allocation4], 0  ;;  %s327_s9 = smov [#allocation2]   ;;  %s328_s11 = smov [#allocation5]  }
   0x3   :  { %s16_s10 = sshll.u32 %s327_s9, 4  ;;  %s25_s12 = sshll.u32 %s328_s11, 4  ;;  %s17_s10 = int_to_ptr.vmem [resolvable:$true] %s16_s10  ;;  %s350_s12 = int_to_ptr.vmem [resolvable:$true] %s25_s12 }
   0x4   :  { %s255_s15 = scalar_lea.hbm %s393_s0, 128 }
   0x5   :  { %p256_p0 = scmp.ne.s32.totalorder %s393_s0, %s255_s15  ;;  %p259_p1 = scmp.lt.u32.totalorder %s255_s15, %s393_s0 }
   0x7   :  { %p261_p2 = pnand %p259_p1, %p256_p0 }
   0x9   :  { %264 = shalt.err (!%p261_p2)
}
   0xa   :  { %s265_s20 = scalar_lea.vmem %s17_s10, 128  ;;  %p270_p4 = scmp.lt.s32.totalorder %s17_s10, %s17_s10 }
   0xb   :  { %p266_p3 = scmp.ne.s32.totalorder %s17_s10, %s265_s20  ;;  %p271_p5 = scmp.lt.s32.totalorder %s265_s20, %s265_s20 }
   0xd   :  { %p272_p6 = por %p271_p5, %p270_p4 }
   0xf   :  { %p273_p7 = pnand %p272_p6, %p266_p3 }
  0x11   :  { %276 = shalt.err (!%p273_p7)
}
  0x12   :  { %19 = dma.hbm_to_vmem [thread:$0]  %s393_s0, 128, %s17_s10, [#allocation3]  }
  0x13   :  { %s277_s25 = scalar_lea.hbm %s394_s1, 1536 }
  0x14   :  { %p278_p8 = scmp.ne.s32.totalorder %s394_s1, %s277_s25  ;;  %p281_p9 = scmp.lt.u32.totalorder %s277_s25, %s394_s1 }
  0x16   :  { %p283_p10 = pnand %p281_p9, %p278_p8 }
  0x18   :  { %286 = shalt.err (!%p283_p10)
}
  0x19   :  { %s287_s30 = scalar_lea.vmem %s350_s12, 1536  ;;  %p292_p12 = scmp.lt.s32.totalorder %s350_s12, %s350_s12 }
  0x1a   :  { %p288_p11 = scmp.ne.s32.totalorder %s350_s12, %s287_s30  ;;  %p293_p13 = scmp.lt.s32.totalorder %s287_s30, %s287_s30 }
  0x1c   :  { %p294_p0 = por %p293_p13, %p292_p12 }
  0x1e   :  { %p295_p1 = pnand %p294_p0, %p288_p11 }
  0x20   :  { %298 = shalt.err (!%p295_p1)
}
  0x21   :  { %s329_s0 = smov 384   ;;  %s330_s3 = smov 24  }
  0x22   :  { %31 = dma.hbm_to_vmem [thread:$0]  %s394_s1, 1536, %s350_s12, [#allocation6], %s329_s0, %s329_s0, %s330_s3  }
  0x23   :  { %321 = dma.done.wait [#allocation3], 128  }
  0x24   :  { %322 = vsyncadd [#allocation3], 4294967168 }
  0x25   :  { %323 = dma.done.wait [#allocation6], 1536  }
  0x26   :  { %324 = vsyncadd [#allocation6], 4294965760  ;;  %v331_v0 = vmov 0.0|0.0   ;;  %v332_v1 = vmov 0.0   ;;  %vm333_vm0 = vmmov 0   ;;  %v40_v2 = vld [vmem:[#allocation5 + $0x8] sm:$0xff] }
  0x27   :  { %241 = vmatprep.subr.bf16.mxu1 %v331_v0  ;;  %119 = vmatprep.mubr.f32.mxu0 %v332_v1  ;;  %v43_v3 = vld [vmem:[#allocation5 + $0x20] sm:$0xff]  ;;  %v42_v6 = vld [vmem:[#allocation5 + $0x18] sm:$0xff]  ;;  %v41_v7 = vld [vmem:[#allocation5 + $0x10] sm:$0xff]  ;;  %vm51_vm1 = vcmask 261120   ;;  %s334_s1 = smov [#allocation7]  }
  0x28   :  { %230 = vmatprep.mubr.msk.f32.mxu1 %vm333_vm0, %v332_v1  ;;  %v39_v4 = vld [vmem:[#allocation5] sm:$0xff]  ;;  %v233_v5 = vpack.c.bf16 %v43_v3, %v40_v2  ;;  %v44_v8 = vld [vmem:[#allocation5 + $0x28] sm:$0xff]  ;;  %v46_v11 = vld [vmem:[#allocation5 + $0x38] sm:$0xff]  ;;  %s205_s6 = sshll.u32 %s334_s1, 4  ;;  %s206_s6 = int_to_ptr.vmem [resolvable:$true] %s205_s6 }
  0x29   :  { %v235_v9 = vpack.c.bf16 %v42_v6, %v39_v4  ;;  %v242_v10 = vpack.c.bf16 %v44_v8, %v41_v7  ;;  %v49_v12 = vld [vmem:[#allocation5 + $0x50] sm:$0xff]  ;;  %v48_v15 = vld [vmem:[#allocation5 + $0x48] sm:$0xff]  ;;  %v47_v16 = vld [vmem:[#allocation5 + $0x40] sm:$0xff]  ;;  %s299_s7 = scalar_lea.vmem %s206_s6, 384  ;;  %p304_p3 = scmp.lt.s32.totalorder %s206_s6, %s206_s6 }
  0x2a   :  { %v45_v13 = vld [vmem:[#allocation5 + $0x30] sm:$0xff]  ;;  %234 = vmatprep.subr.bf16.mxu0 %v233_v5  ;;  %v237_v14 = vpack.c.bf16 %v49_v12, %v46_v11  ;;  %v50_v17 = vld [vmem:[#allocation5 + $0x58] sm:$0xff]  ;;  %p300_p2 = scmp.ne.s32.totalorder %s206_s6, %s299_s7  ;;  %p305_p4 = scmp.lt.s32.totalorder %s299_s7, %s299_s7 }
  0x2b   :  { %236 = vmatpush1.bf16.msra.mxu0 %v235_v9  ;;  %243 = vmatpush3.bf16.msra.mxu1 %v242_v10  ;;  %v239_v18 = vpack.c.bf16 %v48_v15, %v45_v13  ;;  %v245_v19 = vpack.c.bf16 %v50_v17, %v47_v16  ;;  %v38_v20 = vld [vmem:[#allocation2] sm:$0xff] }
  0x2c   :  { %238 = vmatprep.subr.bf16.mxu0 %v237_v14  ;;  %244 = vmatprep.subr.bf16.mxu1 %v331_v0  ;;  %p306_p5 = por %p305_p4, %p304_p3 }
  0x2e   :  { %p307_p6 = pnand %p306_p5, %p300_p2 }
  0x2f   :  { %240 = vmatpush1.bf16.msra.mxu0 %v239_v18  ;;  %246 = vmatpush3.bf16.msra.mxu1 %v245_v19 }
  0x32   :  { %215 = vmatmul.mubr.msk.f32.vlgmr.msra.gmra.mrb[0].mxu0 %vm51_vm1, %v38_v20  ;;  %231 = vmatmul.mubr.msk.f32.vlgmr.msra.gmra.mrb[0].mxu1 %vm51_vm1, %v38_v20 }
 0x105   :  { %v121_v21 = vpop.f32.mrb[0].mxu0  ;;  %v192_v22 = vpop.f32.mrb[0].mxu1 }
 0x106   :  { %196 = vst [vmem:[#allocation7] sm:$0xff] %v121_v21  ;;  %198 = vst [vmem:[#allocation7 + $0x10] sm:$0xff] %v192_v22  ;;  %v123_v23 = vpop.f32.mrb[1].mxu0  ;;  %v232_v24 = vpop.f32.mrb[1].mxu1 }
 0x107   :  { %197 = vst [vmem:[#allocation7 + $0x8] sm:$0xff] %v123_v23 }
 0x108   :  { %310 = shalt.err (!%p307_p6)
}
 0x109   :  { %s311_s10 = scalar_lea.hbm %s395_s2, 384 }
 0x10a   :  { %p312_p7 = scmp.ne.s32.totalorder %s395_s2, %s311_s10  ;;  %p315_p8 = scmp.lt.u32.totalorder %s311_s10, %s395_s2 }
 0x10c   :  { %p317_p9 = pnand %p315_p8, %p312_p7 }
 0x10e   :  { %320 = shalt.err (!%p317_p9)
}
 0x10f   :  { %208 = dma.vmem_to_hbm [thread:$0]  %s206_s6, 384, %s395_s2, [#allocation4]  }
 0x110   :  { %325 = dma.done.wait [#allocation4], 384  }
 0x111   :  { %326 = vsyncadd [#allocation4], 4294966912 }
 0x112   :  { %212 = vsyncpa [#allocation3], 1 }
 0x113   :  { %213 = vsyncpa [#allocation6], 1 }
 0x114   :  { %214 = vsyncpa [#allocation4], 1 }

</bundles_post_ra>
